<compile_context>
chip_gen: v7x
topology: tpu7x:2x2x1
jax: 0.10.0
libtpu: 0.0.40
codegen_flags: <defaults>
</compile_context>

<pallas_src>
import math

import jax
import jax.numpy as jnp
from jax.experimental import pallas as pl
from jax.experimental.pallas import tpu as pltpu


def _round_up(x, m):
    return ((x + m - 1) // m) * m


def _vmem_capacity_bytes():
    try:
        return int(pltpu.get_tpu_info().vmem_capacity_bytes)
    except Exception:
        return 64 * 1024 * 1024  # conservative (v7x-sized) fallback


def _plan_tiling(B, T, D, Dv, in_itemsize):
    """Pick the per-step batch block Bt and a scoped-VMEM limit.

    The VMEM estimate accounts for (a) 128-lane padding of the small minor
    dims D / Dv / T, (b) double buffering of every BlockSpec operand, and
    (c) the in-kernel f32 broadcast temporaries of the two reductions.
    """
    Dp = _round_up(D, 128)     # lane padding of the query/keys minor dim
    Dvp = _round_up(Dv, 128)   # lane padding of the values minor dim
    Ts = _round_up(T, 8)       # sublane padding of T in the 3-D tiles
    Tl = _round_up(T, 128)     # lane padding of T in the energy slab

    in_bytes = (Dp + Ts * Dp + Ts * Dvp) * in_itemsize      # q, k, v tiles
    out_bytes = (Tl + Dvp) * in_itemsize                    # energy, lin tiles
    tmp_bytes = (Ts * Dp + Ts * Dvp + 2 * Tl + Dvp) * 4     # f32 temporaries
    per_row = 2 * (in_bytes + out_bytes) + tmp_bytes        # x2: double buffer

    vmem_cap = _vmem_capacity_bytes()
    # Tile-selection budget: ~40 MiB on a 64 MiB part (v7x), ~100 MiB on the
    # 128 MiB parts (v5e/v6e).
    budget = max(16 * 1024 * 1024,
                 min(vmem_cap - 24 * 1024 * 1024, 100 * 1024 * 1024))

    cap = max(8, (budget // per_row) // 8 * 8)

    # Aim for >= 4 grid steps (>= 2 per TensorCore on v7x; enough steps for
    # the auto-pipeline to overlap input DMA with output writeback on
    # v5e/v6e), while always filling the 8-sublane dim.
    target = max(8, _round_up(pl.cdiv(B, 4), 8))
    Bt = int(min(cap, target))

    needed = Bt * per_row + 4 * 1024 * 1024                 # + compiler slack
    vmem_limit = int(min(max(needed, 32 * 1024 * 1024),
                         vmem_cap - 16 * 1024 * 1024))
    return Bt, vmem_limit


def _make_attention_kernel(scale):
    def kernel(q_ref, k_ref, v_ref, e_ref, o_ref):
        # q_ref: (Bt, D)   k_ref: (Bt, T, D)   v_ref: (Bt, T, Dv)
        # e_ref: (Bt, T)   o_ref: (Bt, Dv)
        q = q_ref[...]
        k = k_ref[...]
        v = v_ref[...]

        # scores[b, t] = sum_d q[b, d] * k[b, t, d]
        # Multiply in the input dtype (bf16 stays bf16 on v6e/v7x), accumulate
        # the lane reduction in f32.  VPU multiply + XLU reduce: free slots on
        # an HBM-bound kernel, and no M=1 MXU matvec / k.T relayout.
        # TODO(synk): for very large T, chunk the time axis with an unrolled
        # fori_loop (two-pass softmax) to bound the live vreg set.
        scores = jnp.sum(q[:, None, :] * k, axis=-1,
                         dtype=jnp.float32) * scale          # (Bt, T) f32

        # softmax over the time axis (dim=2 in the PyTorch module); exact
        # divide — the extra EUP/VPU work hides entirely under the DMA.
        m = jnp.max(scores, axis=-1, keepdims=True)
        p = jnp.exp(scores - m)
        denom = jnp.sum(p, axis=-1, keepdims=True)
        energy = p / denom                                   # (Bt, T) f32

        # lane/sublane-dense store of the attention scores
        e_ref[...] = energy.astype(e_ref.dtype)

        # lin[b, j] = sum_t energy[b, t] * values[b, t, j]
        pe = energy.astype(v.dtype)                          # bf16 mul on v6e/v7x
        lin = jnp.sum(pe[:, :, None] * v, axis=1, dtype=jnp.float32)
        o_ref[...] = lin.astype(o_ref.dtype)

    return kernel


def attention(query, keys, values):
    """Pallas implementation of the PyTorch `Attention.forward`.

    query:  [B, D]
    keys:   [B, T, D]
    values: [B, T, Dv]
    returns (energy [B, 1, T], linear_combination [B, Dv])
    """
    B, D = query.shape
    Bk, T, Dk = keys.shape
    Bv, Tv, Dv = values.shape
    assert Bk == B and Bv == B and Tv == T, "batch/time dims must match"
    assert Dk == D, "query_dim must equal key_dim for the bmm to be valid"

    scale = 1.0 / math.sqrt(D)
    out_dtype = query.dtype
    in_itemsize = jnp.dtype(query.dtype).itemsize

    Bt, vmem_limit = _plan_tiling(B, T, D, Dv, in_itemsize)
    # Partial last block (masked reads / skipped writes) instead of jnp.pad:
    # no extra HBM read+write of keys/values when B % Bt != 0.
    grid = (pl.cdiv(B, Bt),)

    kernel = _make_attention_kernel(scale)

    out_shapes = (
        jax.ShapeDtypeStruct((B, T), out_dtype),    # energy (lane-dense slab)
        jax.ShapeDtypeStruct((B, Dv), out_dtype),   # linear combination
    )

    grid_spec = pltpu.PrefetchScalarGridSpec(
        num_scalar_prefetch=0,
        grid=grid,
        in_specs=[
            pl.BlockSpec((Bt, D), lambda b: (b, 0)),
            pl.BlockSpec((Bt, T, D), lambda b: (b, 0, 0)),
            pl.BlockSpec((Bt, T, Dv), lambda b: (b, 0, 0)),
        ],
        out_specs=[
            pl.BlockSpec((Bt, T), lambda b: (b, 0)),
            pl.BlockSpec((Bt, Dv), lambda b: (b, 0)),
        ],
    )

    energy2d, lin = pl.pallas_call(
        kernel,
        out_shape=out_shapes,
        grid_spec=grid_spec,
        compiler_params=pltpu.CompilerParams(
            dimension_semantics=("parallel",),
            vmem_limit_bytes=vmem_limit,
        ),
    )(query, keys, values)

    energy = energy2d[:, None, :]   # -> [B, 1, T], matching torch unsqueeze(1)
    return energy, lin


def attention_ref(query, keys, values):
    """Pure-JAX reference mirroring the PyTorch forward exactly."""
    D = query.shape[-1]
    scale = 1.0 / math.sqrt(D)
    q = query[:, None, :]                         # unsqueeze(1)   -> [B,1,D]
    k = jnp.swapaxes(keys, 1, 2)                  # transpose(1,2) -> [B,D,T]
    energy = jnp.einsum('bqd,bdt->bqt', q, k) * scale
    energy = jax.nn.softmax(energy, axis=2)
    lin = jnp.einsum('bqt,btv->bqv', energy, values)[:, 0, :]   # squeeze(1)
    return energy, lin


def _check(B, T, D, Dv, seed=0):
    key = jax.random.PRNGKey(seed)
    kq, kk, kv = jax.random.split(key, 3)
    query = jax.random.normal(kq, (B, D), dtype=jnp.float32)
    keys = jax.random.normal(kk, (B, T, D), dtype=jnp.float32)
    values = jax.random.normal(kv, (B, T, Dv), dtype=jnp.float32)

    energy, lin = attention(query, keys, values)
    jax.block_until_ready((energy, lin))

    energy_ref, lin_ref = attention_ref(query, keys, values)
    assert energy.shape == (B, 1, T)
    assert lin.shape == (B, Dv)
    assert jnp.allclose(energy, energy_ref, atol=1e-4, rtol=1e-4)
    assert jnp.allclose(lin, lin_ref, atol=1e-4, rtol=1e-4)


if __name__ == "__main__":
    # query_dim = key_dim = 32, value_dim = 32, seq = 8
    _check(B=16, T=8, D=32, Dv=32)   # even multiple of the batch block
    _check(B=10, T=8, D=32, Dv=32)   # exercises the partial last block path
    print("KERNEL_OK")
</pallas_src>

<mosaic_0001>
module attributes {stable_mosaic.version = 11 : i64} {
  func.func @kernel(%arg0: i32, %arg1: memref<8x32xf32, #tpu.memory_space<vmem>>, %arg2: memref<8x8x32xf32, #tpu.memory_space<vmem>>, %arg3: memref<8x8x32xf32, #tpu.memory_space<vmem>>, %arg4: memref<8x8xf32, #tpu.memory_space<vmem>>, %arg5: memref<8x32xf32, #tpu.memory_space<vmem>>) attributes {dimension_semantics = [#tpu.dimension_semantics<parallel>], iteration_bounds = array<i64: 2>, scalar_prefetch = 0 : i64, scratch_operands = 0 : i64, tpu.core_type = #tpu.core_type<tc>, window_params = [{transform_indices = @transform_0, window_bounds = array<i64: 8, 32>}, {transform_indices = @transform_1, window_bounds = array<i64: 8, 8, 32>}, {transform_indices = @transform_2, window_bounds = array<i64: 8, 8, 32>}, {transform_indices = @transform_3, window_bounds = array<i64: 8, 8>}, {transform_indices = @transform_4, window_bounds = array<i64: 8, 32>}]} {
    %c0 = arith.constant 0 : index
    %c0_0 = arith.constant 0 : index
    %0 = vector.load %arg1[%c0, %c0_0] : memref<8x32xf32, #tpu.memory_space<vmem>>, vector<8x32xf32>
    %c0_1 = arith.constant 0 : index
    %c0_2 = arith.constant 0 : index
    %c0_3 = arith.constant 0 : index
    %1 = vector.load %arg2[%c0_1, %c0_2, %c0_3] : memref<8x8x32xf32, #tpu.memory_space<vmem>>, vector<8x8x32xf32>
    %c0_4 = arith.constant 0 : index
    %c0_5 = arith.constant 0 : index
    %c0_6 = arith.constant 0 : index
    %2 = vector.load %arg3[%c0_4, %c0_5, %c0_6] : memref<8x8x32xf32, #tpu.memory_space<vmem>>, vector<8x8x32xf32>
    %3 = vector.shape_cast %0 : vector<8x32xf32> to vector<8x1x32xf32>
    %4 = vector.broadcast %3 : vector<8x1x32xf32> to vector<8x8x32xf32>
    %5 = arith.mulf %4, %1 : vector<8x8x32xf32>
    %cst = arith.constant dense<0.000000e+00> : vector<8x8xf32>
    %6 = vector.multi_reduction <add>, %5, %cst [2] : vector<8x8x32xf32> to vector<8x8xf32>
    %cst_7 = arith.constant 0.176776692 : f32
    %7 = vector.broadcast %cst_7 : f32 to vector<8x8xf32>
    %8 = arith.mulf %6, %7 : vector<8x8xf32>
    %cst_8 = arith.constant dense<0xFF800000> : vector<8xf32>
    %9 = vector.multi_reduction <maximumf>, %8, %cst_8 [1] : vector<8x8xf32> to vector<8xf32>
    %10 = vector.shape_cast %9 : vector<8xf32> to vector<8x1xf32>
    %11 = vector.broadcast %10 : vector<8x1xf32> to vector<8x8xf32>
    %12 = arith.subf %8, %11 : vector<8x8xf32>
    %13 = math.exp %12 : vector<8x8xf32>
    %cst_9 = arith.constant dense<0.000000e+00> : vector<8xf32>
    %14 = vector.multi_reduction <add>, %13, %cst_9 [1] : vector<8x8xf32> to vector<8xf32>
    %15 = vector.shape_cast %14 : vector<8xf32> to vector<8x1xf32>
    %16 = vector.broadcast %15 : vector<8x1xf32> to vector<8x8xf32>
    %17 = arith.divf %13, %16 : vector<8x8xf32>
    %c0_10 = arith.constant 0 : index
    %c0_11 = arith.constant 0 : index
    %18 = vector.load %arg4[%c0_10, %c0_11] : memref<8x8xf32, #tpu.memory_space<vmem>>, vector<8x8xf32>
    tpu.vector_store %arg4[%c0_10, %c0_11], %17 {strides = array<i32>} : memref<8x8xf32, #tpu.memory_space<vmem>>, vector<8x8xf32>,
    %19 = vector.shape_cast %17 : vector<8x8xf32> to vector<8x8x1xf32>
    %20 = vector.broadcast %19 : vector<8x8x1xf32> to vector<8x8x32xf32>
    %21 = arith.mulf %20, %2 : vector<8x8x32xf32>
    %cst_12 = arith.constant dense<0.000000e+00> : vector<8x32xf32>
    %22 = vector.multi_reduction <add>, %21, %cst_12 [1] : vector<8x8x32xf32> to vector<8x32xf32>
    %c0_13 = arith.constant 0 : index
    %c0_14 = arith.constant 0 : index
    %23 = vector.load %arg5[%c0_13, %c0_14] : memref<8x32xf32, #tpu.memory_space<vmem>>, vector<8x32xf32>
    tpu.vector_store %arg5[%c0_13, %c0_14], %22 {strides = array<i32>} : memref<8x32xf32, #tpu.memory_space<vmem>>, vector<8x32xf32>,
    return
  }
  func.func @transform_0(%arg0: i32) -> (i32, i32) {
    %c0_i32 = arith.constant 0 : i32
    %c0_i32_0 = arith.constant 0 : i32
    return %arg0, %c0_i32 : i32, i32
  }
  func.func @transform_1(%arg0: i32) -> (i32, i32, i32) {
    %c0_i32 = arith.constant 0 : i32
    %c0_i32_0 = arith.constant 0 : i32
    %c0_i32_1 = arith.constant 0 : i32
    return %arg0, %c0_i32, %c0_i32_0 : i32, i32, i32
  }
  func.func @transform_2(%arg0: i32) -> (i32, i32, i32) {
    %c0_i32 = arith.constant 0 : i32
    %c0_i32_0 = arith.constant 0 : i32
    %c0_i32_1 = arith.constant 0 : i32
    return %arg0, %c0_i32, %c0_i32_0 : i32, i32, i32
  }
  func.func @transform_3(%arg0: i32) -> (i32, i32) {
    %c0_i32 = arith.constant 0 : i32
    %c0_i32_0 = arith.constant 0 : i32
    return %arg0, %c0_i32 : i32, i32
  }
  func.func @transform_4(%arg0: i32) -> (i32, i32) {
    %c0_i32 = arith.constant 0 : i32
    %c0_i32_0 = arith.constant 0 : i32
    return %arg0, %c0_i32 : i32, i32
  }
}

</mosaic_0001>

<bundles_post_ra>
// kernel: tpu_custom_call.1
= control target key start
LH: loop header
LB: loop body
LE: loop exit
PB: predicated region body
PF: predicated region fallthrough
CT: control target
= control target key end

     0   :  { %s1774_s0 = inlined_call_operand.hbm [shape: f32[16,32], index: 0, kind: input, shape index: {}]   ;;  %s1775_s1 = inlined_call_operand.hbm [shape: f32[16,8,32], index: 1, kind: input, shape index: {}]   ;;  %s1776_s2 = inlined_call_operand.hbm [shape: f32[16,8,32], index: 2, kind: input, shape index: {}]   ;;  %s1777_s3 = inlined_call_operand.vmem [shape: f32[16,8], index: 3, kind: output, shape index: {0}]   ;;  %s1778_s4 = inlined_call_operand.hbm [shape: f32[16,32], index: 4, kind: output, shape index: {1}]  }
   0x1   :  { %1786 = sst [smem:[#allocation14_spill]] %s1775_s1 }
   0x2   :  { %10 = vsyncpa [#allocation3], 0 }
   0x3   :  { %12 = vsyncpa [#allocation3 + $0x1], 0 }
   0x4   :  { %13 = vsyncpa [#allocation6], 0 }
   0x5   :  { %15 = vsyncpa [#allocation6 + $0x1], 0 }
   0x6   :  { %16 = vsyncpa [#allocation4], 0 }
   0x7   :  { %18 = vsyncpa [#allocation4 + $0x1], 0  ;;  %s1342_s15 = smov 0   ;;  %s1344_s16 = smov 0  }
   0x8   :  { %s1346_s17 = smov 0   ;;  %s1348_s18 = smov 0  }
   0x9 LB: > { %1787 = sst [smem:[#allocation12_spill]] %s1303_s17  ;;  %s1363_s19 = sadd.s32 4294967295, %s1307_s18   ;;  %s1307_s18 = sphi %s1348_s18, %s1808_s18   ;;  %s1303_s17 = sphi %s1346_s17, %s1805_s17   ;;  %s1299_s16 = sphi %s1344_s16, %s1807_s16   ;;  %s1295_s15 = sphi %s1342_s15, %s1806_s15  }
   0xa   : > { %s1029_s20 = sadd.s32 4294967294, %s1307_s18   ;;  %s1367_s21 = sadd.s32 1, %s1307_s18  }
   0xb   : > { %s31_s22 = sadd.s32 1, %s1303_s17  ;;  %s28_s23 = ssub.s32 %s1307_s18, %s1367_s21 }
   0xc   : > { %p38_p0 = scmp.ne.s32.totalorder %s1303_s17, %s1299_s16  ;;  %p29_p1 = scmp.eq.s32.totalorder %s28_s23, 0 }
   0xd   : > { %p39_p2 = scmp.eq.s32.totalorder %s1307_s18, 0  ;;  %p44_p3 = scmp.ne.s32.totalorder %s1299_s16, %s1295_s15 }
   0xe   : > { %p45_p4 = scmp.eq.s32.totalorder %s1363_s19, 0  ;;  %p146_p7 = scmp.eq.s32.totalorder %s1363_s19, 1 }
   0xf   : > { %s1379_s24 = scalar_select %p29_p1, %s1303_s17, %s31_s22  }
  0x10   : > { %p40_p5 = por %p39_p2, %p38_p0  ;;  %p1381_p6 = por %p45_p4, %p44_p3 }
  0x11   : > { %1788 = sst [smem:[#allocation13_spill]] %s1379_s24  ;;  %p152_p8 = scmp.eq.s32.totalorder %s1029_s20, 1 }
  0x12   : > { %s1789_s25 = scalar_select %p1381_p6, 1, 0 }
  0x13   : > { %p1074_p10 = scmp.lt.s32.totalorder %s1307_s18, 2  ;;  %p1388_p11 = por %p146_p7, %p38_p0 }
  0x14   : > { %p1392_p12 = por %p152_p8, %p44_p3  ;;  %s1397_s28 = sand.u32 1, %s1303_s17  }
  0x15   : > { %s1790_s26 = scalar_select %p1388_p11, 1, 0 }
  0x16   : > { %s1791_s27 = scalar_select %p1392_p12, 1, 0 }
  0x17   : > { %p1399_p13 = pnand %p1074_p10, %p40_p5  ;;  %s190_s30 = sand.u32 1, %s1307_s18  }
  0x18   : > { %s1034_s5 = sshll.u32 %s1397_s28, 6  ;;  %s1050_s6 = sshll.u32 %s1307_s18, 10 }
  0x19   : > { %s1792_s29 = scalar_select %p1399_p13, 1, 0 }
  0x1a   : > { %s1793_s1 = sld [smem:[#allocation14_spill]]  ;;  %s194_s10 = scalar_lea.vmem [#allocation5], %s1034_s5 }
  0x1b   : > { %s201_s11 = sshll.u32 %s194_s10, 4  ;;  %s1417_s12 = scalar_lea.sflag [#allocation6], %s190_s30  ;;  %s1415_s11 = int_to_ptr.vmem [resolvable:$true] %s201_s11 }
  0x1c   : > { %p1423_p1 = pneg %p1399_p13 }
  0x20   : > { %s1411_s9 = scalar_lea.hbm %s1793_s1, %s1050_s6  ;;  %s1152_s23 = scalar_lea.hbm %s1793_s1, 2048 }
  0x21   : > { %s1147_s13 = scalar_lea.hbm %s1411_s9, 1024  ;;  %p1153_p4 = scmp.lt.u32.totalorder %s1411_s9, %s1793_s1 }
  0x22   : > { %p1148_p0 = scmp.ne.s32.totalorder %s1411_s9, %s1147_s13  ;;  %p1154_p5 = scmp.lt.u32.totalorder %s1152_s23, %s1147_s13 }
  0x23   : > { %p1156_p8 = scmp.lt.u32.totalorder %s1147_s13, %s1411_s9 }
  0x24   : > { %p1150_p2 = pnand %p1423_p1, %p1148_p0  ;;  %p1155_p7 = por %p1154_p5, %p1153_p4 }
  0x26   : > { %p1151_p3 = pneg %p1150_p2  ;;  %p1157_p10 = por %p1156_p8, %p1155_p7 }
  0x28   : > { %p1158_p9 = pnand %p1157_p10, %p1151_p3 }
  0x2a   : > { %1161 = shalt.err (!%p1158_p9)
}
  0x2b   : > { %s1162_s30 = scalar_lea.vmem %s1415_s11, 1024  ;;  %s1309_s10 = smov [#allocation5]  }
  0x2c   : > { %p1163_p0 = scmp.ne.s32.totalorder %s1415_s11, %s1162_s30  ;;  %s1167_s20 = sshll.u32 %s1309_s10, 4  ;;  %s1168_s20 = int_to_ptr.vmem [resolvable:$false] %s1167_s20 }
  0x2d   : > { %s1169_s22 = scalar_lea.vmem %s1168_s20, 2048  ;;  %p1170_p11 = scmp.lt.s32.totalorder %s1415_s11, %s1168_s20 }
  0x2e   : > { %p1165_p2 = pnand %p1163_p0, %p1423_p1  ;;  %p1171_p6 = scmp.lt.s32.totalorder %s1169_s22, %s1162_s30 }
  0x30   : > { %p1166_p12 = pneg %p1165_p2  ;;  %p1172_p4 = por %p1171_p6, %p1170_p11 }
  0x32   : > { %p1173_p5 = pnand %p1172_p4, %p1166_p12 }
  0x34   : > { %1176 = shalt.err (!%p1173_p5)
}
  0x35   : > { %s1781_s13 = smov 128   ;;  %s1782_s23 = smov 8  }
  0x36   : > { %1066 = dma.hbm_to_vmem [thread:$0]  (!%p1399_p13), %s1411_s9, 1024, %s1415_s11, %s1417_s12, %s1781_s13, %s1781_s13, %s1782_s23  }
  0x37   : > { %s1455_s30 = scalar_lea.hbm %s1776_s2, %s1050_s6  ;;  %s215_s10 = scalar_lea.vmem [#allocation7], %s1034_s5 }
  0x38   : > { %s222_s20 = sshll.u32 %s215_s10, 4  ;;  %p1040_p6 = scmp.ge.s32.totalorder %s1307_s18, 1  ;;  %s1459_s20 = int_to_ptr.vmem [resolvable:$true] %s222_s20 }
  0x39   : > { %p230_p9 = scmp.lt.s32.totalorder %s1307_s18, 3  ;;  %s1032_s22 = sshll.u32 %s1397_s28, 3 }
  0x3a   : > { %s1033_s1 = sshll.u32 %s1307_s18, 7  ;;  %s176_s5 = scalar_lea.vmem [#allocation2], %s1032_s22 }
  0x3b   : > { %p1465_p11 = pnand %p1040_p6, %p230_p9  ;;  %s1472_s7 = scalar_lea.hbm %s1774_s0, %s1033_s1 }
  0x3c   : > { %s183_s6 = sshll.u32 %s176_s5, 4  ;;  %s173_s8 = scalar_lea.sflag [#allocation3], %s1397_s28  ;;  %s184_s6 = int_to_ptr.vmem [resolvable:$true] %s183_s6 }
  0x3d   : > { %s1795_s24 = scalar_select %p1465_p11, 1, 0 }
  0x3e   : > { %s1177_s10 = scalar_lea.hbm %s1472_s7, 128  ;;  %s1182_s17 = scalar_lea.hbm %s1774_s0, 256 }
  0x3f   : > { %p1178_p12 = scmp.ne.s32.totalorder %s1472_s7, %s1177_s10  ;;  %p1183_p8 = scmp.lt.u32.totalorder %s1472_s7, %s1774_s0 }
  0x40   : > { %p1184_p10 = scmp.lt.u32.totalorder %s1182_s17, %s1177_s10  ;;  %p1186_p2 = scmp.lt.u32.totalorder %s1177_s10, %s1472_s7 }
  0x41   : > { %p1180_p3 = pnand %p1178_p12, %p1423_p1 }
  0x42   : > { %p1185_p0 = por %p1184_p10, %p1183_p8 }
  0x43   : > { %p1181_p7 = pneg %p1180_p3 }
  0x44   : > { %p1187_p4 = por %p1186_p2, %p1185_p0 }
  0x46   : > { %p1188_p5 = pnand %p1187_p4, %p1181_p7 }
  0x48   : > { %1191 = shalt.err (!%p1188_p5)
}
  0x49   : > { %s1192_s28 = scalar_lea.vmem %s184_s6, 128  ;;  %s1312_s22 = smov [#allocation2]  }
  0x4a   : > { %p1193_p6 = scmp.ne.s32.totalorder %s184_s6, %s1192_s28  ;;  %s1197_s11 = sshll.u32 %s1312_s22, 4  ;;  %s1198_s11 = int_to_ptr.vmem [resolvable:$false] %s1197_s11 }
  0x4b   : > { %s1199_s13 = scalar_lea.vmem %s1198_s11, 256  ;;  %p1200_p3 = scmp.lt.s32.totalorder %s184_s6, %s1198_s11 }
  0x4c   : > { %p1195_p9 = pnand %p1193_p6, %p1423_p1  ;;  %p1201_p11 = scmp.lt.s32.totalorder %s1199_s13, %s1192_s28 }
  0x4e   : > { %p1196_p12 = pneg %p1195_p9  ;;  %p1202_p13 = por %p1201_p11, %p1200_p3 }
  0x50   : > { %p1203_p8 = pnand %p1202_p13, %p1196_p12 }
  0x52   : > { %1206 = shalt.err (!%p1203_p8)
}
  0x53   : > { %p1796_p10 = scmp.ne.s32.totalorder %s1792_s29, 0  ;;  %s1207_s17 = scalar_lea.hbm %s1455_s30, 1024 }
  0x54   : > { %p1208_p7 = scmp.ne.s32.totalorder %s1455_s30, %s1207_s17  ;;  %s1212_s10 = scalar_lea.hbm %s1776_s2, 2048 }
  0x55   : > { %1063 = dma.hbm_to_vmem [thread:$0]  (!%p1796_p10), %s1472_s7, 128, %s184_s6, %s173_s8  }
  0x56   : > { %p1210_p0 = pnand %p1208_p7, %p1423_p1  ;;  %p1213_p13 = scmp.lt.u32.totalorder %s1455_s30, %s1776_s2 }
  0x57   : > { %p1214_p11 = scmp.lt.u32.totalorder %s1212_s10, %s1207_s17  ;;  %p1216_p5 = scmp.lt.u32.totalorder %s1207_s17, %s1455_s30 }
  0x58   : > { %p1211_p2 = pneg %p1210_p0 }
  0x59   : > { %p1215_p4 = por %p1214_p11, %p1213_p13 }
  0x5b   : > { %p1217_p6 = por %p1216_p5, %p1215_p4 }
  0x5d   : > { %p1218_p9 = pnand %p1217_p6, %p1211_p2 }
  0x5f   : > { %1221 = shalt.err (!%p1218_p9)
}
  0x60   : > { %s1222_s7 = scalar_lea.vmem %s1459_s20, 1024  ;;  %s1313_s6 = smov [#allocation7]  }
  0x61   : > { %p1223_p12 = scmp.ne.s32.totalorder %s1459_s20, %s1222_s7  ;;  %s1227_s8 = sshll.u32 %s1313_s6, 4  ;;  %s1228_s8 = int_to_ptr.vmem [resolvable:$false] %s1227_s8 }
  0x62   : > { %s1229_s28 = scalar_lea.vmem %s1228_s8, 2048  ;;  %p1230_p7 = scmp.lt.s32.totalorder %s1459_s20, %s1228_s8 }
  0x63   : > { %p1225_p3 = pnand %p1223_p12, %p1423_p1  ;;  %p1231_p0 = scmp.lt.s32.totalorder %s1229_s28, %s1222_s7 }
  0x65   : > { %p1226_p8 = pneg %p1225_p3  ;;  %p1232_p13 = por %p1231_p0, %p1230_p7 }
  0x67   : > { %p1233_p11 = pnand %p1232_p13, %p1226_p8 }
  0x69   : > { %1236 = shalt.err (!%p1233_p11)
}
  0x6a   : > { %s1797_s22 = smov 8   ;;  %s1798_s11 = smov 128  }
  0x6b   : > { %1069 = dma.hbm_to_vmem [thread:$0]  (!%p1796_p10), %s1455_s30, 1024, %s1459_s20, %s1417_s12, %s1798_s11, %s1798_s11, %s1797_s22  }
  0x6c   : > { %p1799_p1 = scmp.ne.s32.totalorder %s1795_s24, 0 }
  0x6d   : > { %s1520_s14 = sand.u32 (!%p1799_p1), 1, %s1299_s16   ;;  %p1800_p2 = scmp.ne.s32.totalorder (!%p1799_p1), %s1789_s25, 0 }
  0x6e   : > { %234 = sbr.rel (%p1799_p1) target bundleno = 957 (0x3bd), region = 32  ;;  %s1041_s13 = sshll.u32 (!%p1799_p1), %s1520_s14, 3 }
  0x6f   : > { %s237_s17 = scalar_lea.sflag (!%p1799_p1), [#allocation3], %s1520_s14  ;;  %s240_s29 = scalar_lea.vmem (!%p1799_p1), [#allocation2], %s1041_s13 }
  0x75   : > { %1282 = dma.done.wait (%p1800_p2), %s237_s17, 128  }
  0x76   : > { %1284 = vsyncadd (%p1800_p2), %s237_s17, 4294967168  ;;  %s245_s24 = sand.u32 1, %s1363_s19   ;;  %s1042_s12 = sshll.u32 %s1520_s14, 6 }
  0x77   : > { %s246_s30 = scalar_lea.sflag [#allocation6], %s245_s24  ;;  %s1534_s20 = scalar_lea.vmem [#allocation5], %s1042_s12 }
  0x78   : > { %1286 = dma.done.wait (%p1800_p2), %s246_s30, 2048  }
  0x79   : > { %1288 = vsyncadd (%p1800_p2), %s246_s30, 4294965248  ;;  %v325_v0 = vlaneseq  ;;  %v1314_v1 = vmov 1966171168   ;;  %v303_v8 = vld [vmem:[%s240_s29] sm:$0xff]  ;;  %v304_v15 = vld [vmem:[%s1534_s20] sm:$0xff]  ;;  %vm418_vm0 = vcmask 261120  }
  0x7a   : > { %v323_v2 = vunpack.c.l.s4 %v1314_v1  ;;  %v321_v11 = vcombine.high %v303_v8, %v303_v8  ;;  %v306_v20 = vld [vmem:[%s1534_s20 + $0x10] sm:$0xff]  ;;  %v305_v21 = vld [vmem:[%s1534_s20 + $0x8] sm:$0xff]  ;;  %v308_v27 = vld [vmem:[%s1534_s20 + $0x20] sm:$0xff]  ;;  %vm493_vm1 = vcmask 1041409   ;;  %vm495_vm2 = vcmask 1042434   ;;  %s1672_s25 = scalar_lea.vmem [#allocation7], %s1042_s12 }
  0x7b   : > { %v1540_v3 = vshrl.u32 %v325_v0, 7  ;;  %v460_v4 = vand.u32 127, %v325_v0  ;;  %v307_v28 = vld [vmem:[%s1534_s20 + $0x18] sm:$0xff]  ;;  %v309_v37 = vld [vmem:[%s1534_s20 + $0x28] sm:$0xff]  ;;  %v310_v44 = vld [vmem:[%s1534_s20 + $0x30] sm:$0xff]  ;;  %vm497_vm3 = vcmask 1043459  }
  0x7c   : > { %v324_v5 = vunpack.c.0.s8 %v323_v2  ;;  %v311_v48 = vld [vmem:[%s1534_s20 + $0x38] sm:$0xff]  ;;  %vm499_vm4 = vcmask 1044484   ;;  %vm501_vm5 = vcmask 1045509   ;;  %vm503_vm6 = vcmask 1046534   ;;  %p299_p10 = scmp.lt.s32.totalorder %s1363_s19, 1  ;;  %s1047_s7 = sshll.u32 %s1363_s19, 7 }
  0x7d   : > { %v1543_v6 = vsub.s32 %v460_v4, %v1540_v3  ;;  %v1547_v10 = vsub.s32 0, %v1540_v3  ;;  %vm505_vm7 = vcmask 1047559   ;;  %vm508_vm8 = vcmask 64512   ;;  %s296_s6 = scalar_lea.vmem [#allocation8], %s1041_s13  ;;  %s1728_s11 = scalar_lea.hbm %s1778_s4, %s1047_s7 }
  0x7e   : > { %v327_v7 = vsub.s32 %v324_v5, %v1540_v3  ;;  %s1693_s23 = scalar_select %p299_p10, %s1363_s19, 1 }
  0x7f   : > { %s892_s8 = sshll.u32 %s296_s6, 4  ;;  %s876_s19 = scalar_lea.sflag [#allocation4], %s1520_s14  ;;  %s1730_s8 = int_to_ptr.vmem [resolvable:$true] %s892_s8 }
  0x80   : > { %v328_v9 = vrot.slane %v303_v8, %v327_v7  ;;  %v335_v14 = vrot.slane %v321_v11, %v327_v7  ;;  %s1045_s5 = sshll.u32 %s1693_s23, 3  ;;  %s1237_s13 = scalar_lea.vmem %s1730_s8, 128 }
  0x81   : > { %s302_s1 = scalar_lea.vmem %s1777_s3, %s1045_s5  ;;  %p1238_p4 = scmp.ne.s32.totalorder %s1730_s8, %s1237_s13 }
  0x82   : > { %v344_v12 = vrot.slane %v328_v9, %v327_v7  ;;  %v336_v13 = vcombine.high %v328_v9, %v328_v9  ;;  %v351_v19 = vrot.slane %v335_v14, %v327_v7  ;;  %v337_v22 = vcombine.high %v335_v14, %v335_v14  ;;  %p1801_p5 = scmp.ne.s32.totalorder %s1790_s26, 0  ;;  %s1316_s17 = smov [#allocation8]  }
  0x83   : > { %s1241_s29 = sshll.u32 %s1316_s17, 4  ;;  %s1242_s29 = int_to_ptr.vmem [resolvable:$false] %s1241_s29 }
  0x84   : > { %v373_v16 = vrot.slane %v344_v12, %v1547_v10  ;;  %v366_v17 = vcombine.high %v344_v12, %v344_v12  ;;  %v358_v18 = vrot.slane %v336_v13, %v327_v7  ;;  %v389_v29 = vrot.slane %v351_v19, %v1547_v10  ;;  %p1239_p6 = pnand %p1238_p4, %p1801_p5  ;;  %s1243_s24 = scalar_lea.vmem %s1242_s29, 256 }
  0x85   : > { %v365_v30 = vrot.slane %v337_v22, %v327_v7  ;;  %v367_v31 = vcombine.high %v351_v19, %v351_v19  ;;  %p1244_p12 = scmp.lt.s32.totalorder %s1730_s8, %s1242_s29  ;;  %p1245_p3 = scmp.lt.s32.totalorder %s1243_s24, %s1237_s13 }
  0x86   : > { %v410_v23 = vmul.f32 %v373_v16, %v304_v15  ;;  %v381_v24 = vrot.slane %v366_v17, %v1547_v10  ;;  %v377_v25 = vrot.slane %v358_v18, %v1547_v10  ;;  %v368_v26 = vcombine.high %v358_v18, %v358_v18  ;;  %p1240_p9 = pneg %p1239_p6 }
  0x87   : > { %v414_v36 = vmul.f32 %v389_v29, %v308_v27  ;;  %v393_v38 = vrot.slane %v365_v30, %v1547_v10  ;;  %v369_v39 = vcombine.high %v365_v30, %v365_v30  ;;  %v397_v43 = vrot.slane %v367_v31, %v1547_v10  ;;  %p1246_p8 = por %p1245_p3, %p1244_p12 }
  0x88   : > { %v419_v32 = vsel %vm418_vm0, %v410_v23, 0.0  ;;  %v412_v33 = vmul.f32 %v381_v24, %v306_v20  ;;  %v411_v34 = vmul.f32 %v377_v25, %v305_v21  ;;  %v385_v35 = vrot.slane %v368_v26, %v1547_v10 }
  0x89   : > { %420 = vadd.xlane.f32.xlu0 %v419_v32  ;;  %v415_v46 = vmul.f32 %v393_v38, %v309_v37  ;;  %v401_v47 = vrot.slane %v369_v39, %v1547_v10  ;;  %v431_v49 = vsel %vm418_vm0, %v414_v36, 0.0  ;;  %v416_v50 = vmul.f32 %v397_v43, %v310_v44  ;;  %p1247_p7 = pnand %p1246_p8, %p1240_p9 }
  0x8a   : > { %v425_v40 = vsel %vm418_vm0, %v412_v33, 0.0  ;;  %v422_v41 = vsel %vm418_vm0, %v411_v34, 0.0  ;;  %v413_v42 = vmul.f32 %v385_v35, %v307_v28  ;;  %v1315_v26 = vmov 0  }
  0x8b   : > { %426 = vadd.xlane.f32.xlu1 %v425_v40  ;;  %v434_v51 = vsel %vm418_vm0, %v415_v46, 0.0  ;;  %v417_v52 = vmul.f32 %v401_v47, %v311_v48  ;;  %v437_v53 = vsel %vm418_vm0, %v416_v50, 0.0  ;;  %1113 = vset.pattern.permute.xlu0 %v1315_v26  ;;  %v519_v27 = vsub.s32 1, %v1540_v3 }
  0x8c   : > { %v428_v45 = vsel %vm418_vm0, %v413_v42, 0.0  ;;  %1112 = vset.pattern.permute.xlu1 %v1315_v26  ;;  %v523_v28 = vsub.s32 2, %v1540_v3  ;;  %v527_v29 = vsub.s32 3, %v1540_v3  ;;  %v531_v34 = vsub.s32 4, %v1540_v3 }
  0x8d   : > { %423 = vadd.xlane.f32.xlu0 %v422_v41  ;;  %v440_v54 = vsel %vm418_vm0, %v417_v52, 0.0  ;;  %v535_v41 = vsub.s32 5, %v1540_v3 }
  0x8f   : > { %429 = vadd.xlane.f32.xlu1 %v428_v45  ;;  %v539_v45 = vsub.s32 6, %v1540_v3 }
  0x91   : > { %432 = vadd.xlane.f32.xlu0 %v431_v49  ;;  %v543_v49 = vsub.s32 7, %v1540_v3 }
  0x93   : > { %435 = vadd.xlane.f32.xlu1 %v434_v51 }
  0x95   : > { %438 = vadd.xlane.f32.xlu0 %v437_v53 }
  0x97   : > { %441 = vadd.xlane.f32.xlu1 %v440_v54 }
 0x116   : > { %v421_v55 = vpop.xlane.xlu0 %420 }
 0x117   : > { %v443_v57 = vmul.f32 0.17677669, %v421_v55 }
 0x118   : > { %v427_v56 = vpop.xlane.xlu1 %426 }
 0x119   : > { %v445_v58 = vmul.f32 0.17677669, %v427_v56  ;;  %v464_v62 = vrot.slane %v443_v57, %v1543_v6 }
 0x11a   : > { %v424_v59 = vpop.xlane.xlu0 %423 }
 0x11b   : > { %v444_v60 = vmul.f32 0.17677669, %v424_v59  ;;  %v472_v1 = vrot.slane %v445_v58, %v1543_v6 }
 0x11c   : > { %v430_v61 = vpop.xlane.xlu1 %429 }
 0x11d   : > { %v468_v63 = vrot.slane %v444_v60, %v1543_v6  ;;  %v446_v0 = vmul.f32 0.17677669, %v430_v61 }
 0x11e   : > { %v433_v2 = vpop.xlane.xlu0 %432 }
 0x11f   : > { %v494_v4 = vsel %vm493_vm1, %v468_v63, %v464_v62  ;;  %v476_v5 = vrot.slane %v446_v0, %v1543_v6  ;;  %v447_v7 = vmul.f32 0.17677669, %v433_v2 }
 0x120   : > { %v496_v8 = vsel %vm495_vm2, %v472_v1, %v494_v4  ;;  %v436_v9 = vpop.xlane.xlu1 %435 }
 0x121   : > { %v498_v11 = vsel %vm497_vm3, %v476_v5, %v496_v8  ;;  %v480_v12 = vrot.slane %v447_v7, %v1543_v6  ;;  %v448_v13 = vmul.f32 0.17677669, %v436_v9 }
 0x122   : > { %v439_v14 = vpop.xlane.xlu0 %438 }
 0x123   : > { %v500_v15 = vsel %vm499_vm4, %v480_v12, %v498_v11  ;;  %v484_v16 = vrot.slane %v448_v13, %v1543_v6  ;;  %v449_v17 = vmul.f32 0.17677669, %v439_v14 }
 0x124   : > { %v442_v18 = vpop.xlane.xlu1 %441 }
 0x125   : > { %v488_v19 = vrot.slane %v449_v17, %v1543_v6  ;;  %v450_v20 = vmul.f32 0.17677669, %v442_v18  ;;  %v502_v21 = vsel %vm501_vm5, %v484_v16, %v500_v15 }
 0x127   : > { %v492_v22 = vrot.slane %v450_v20, %v1543_v6  ;;  %v504_v23 = vsel %vm503_vm6, %v488_v19, %v502_v21 }
 0x129   : > { %v506_v24 = vsel %vm505_vm7, %v492_v22, %v504_v23 }
 0x12a   : > { %v509_v25 = vsel %vm508_vm8, %v506_v24, -inf }
 0x12b   : > { %510 = vmax.xlane.f32.xlu0 %v509_v25 }
 0x1b8   : > { %v511_v30 = vpop.xlane.xlu0 %510 }
 0x1b9   : > { %v516_v31 = vrot.slane %v511_v30, %v1547_v10  ;;  %v520_v32 = vrot.slane %v511_v30, %v519_v27  ;;  %v524_v33 = vrot.slane %v511_v30, %v523_v28  ;;  %v528_v35 = vrot.slane %v511_v30, %v527_v29 }
 0x1ba   : > { %v532_v42 = vrot.slane %v511_v30, %v531_v34  ;;  %v536_v46 = vrot.slane %v511_v30, %v535_v41  ;;  %v540_v50 = vrot.slane %v511_v30, %v539_v45  ;;  %v544_v55 = vrot.slane %v511_v30, %v543_v49 }
 0x1bb   : > { %v553_v36 = vsub.f32 %v443_v57, %v516_v31  ;;  %v554_v37 = vsub.f32 %v444_v60, %v520_v32  ;;  %v555_v38 = vsub.f32 %v445_v58, %v524_v33  ;;  %v556_v43 = vsub.f32 %v446_v0, %v528_v35 }
 0x1bc   : > { %v557_v47 = vsub.f32 %v447_v7, %v532_v42  ;;  %v558_v51 = vsub.f32 %v448_v13, %v536_v46  ;;  %v559_v56 = vsub.f32 %v449_v17, %v540_v50  ;;  %v560_v59 = vsub.f32 %v450_v20, %v544_v55 }
 0x1bd   : > { %v561_v39 = vmul.f32 1.442695, %v553_v36  ;;  %v563_v40 = vmul.f32 1.442695, %v554_v37  ;;  %v565_v44 = vmul.f32 1.442695, %v555_v38 }
 0x1be   : > { %v567_v48 = vmul.f32 1.442695, %v556_v43  ;;  %v569_v52 = vmul.f32 1.442695, %v557_v47  ;;  %v571_v57 = vmul.f32 1.442695, %v558_v51 }
 0x1bf   : > { %1115 = vpow2.f32 %v561_v39  ;;  %v573_v60 = vmul.f32 1.442695, %v559_v56  ;;  %v575_v62 = vmul.f32 1.442695, %v560_v59  ;;  %v312_v56 = vld [vmem:[%s1672_s25] sm:$0xff] }
 0x1c0   : > { %1117 = vpow2.f32 %v563_v40 }
 0x1c1   : > { %1119 = vpow2.f32 %v565_v44 }
 0x1c2   : > { %1121 = vpow2.f32 %v567_v48 }
 0x1c3   : > { %1123 = vpow2.f32 %v569_v52 }
 0x1c4   : > { %1125 = vpow2.f32 %v571_v57  ;;  %v314_v57 = vld [vmem:[%s1672_s25 + $0x10] sm:$0xff] }
 0x1c5   : > { %1127 = vpow2.f32 %v573_v60 }
 0x1c6   : > { %1129 = vpow2.f32 %v575_v62  ;;  %v315_v62 = vld [vmem:[%s1672_s25 + $0x18] sm:$0xff] }
 0x1c9   : > { %v1116_v53 = vpop.eup %1115 }
 0x1ca   : > { %v1609_v54 = vpop.eup %1117  ;;  %586 = vperm.xlu1 %1112, %v1116_v53  }
 0x1cb   : > { %589 = vperm.xlu0 %1113, %v1609_v54   ;;  %v1614_v58 = vpop.eup %1119 }
 0x1cc   : > { %v1617_v61 = vpop.eup %1121 }
 0x1cd   : > { %v1620_v63 = vpop.eup %1123 }
 0x1ce   : > { %592 = vperm.xlu1 %1112, %v1614_v58   ;;  %v1623_v0 = vpop.eup %1125 }
 0x1cf   : > { %v1626_v1 = vpop.eup %1127 }
 0x1d0   : > { %v1629_v2 = vpop.eup %1129 }
 0x1d2   : > { %595 = vperm.xlu1 %1112, %v1617_v61  }
 0x1d6   : > { %598 = vperm.xlu1 %1112, %v1620_v63  }
 0x1da   : > { %601 = vperm.xlu1 %1112, %v1623_v0  }
 0x1de   : > { %604 = vperm.xlu1 %1112, %v1626_v1  }
 0x1e2   : > { %607 = vperm.xlu1 %1112, %v1629_v2  }
 0x249   : > { %v587_v4 = vpop.permute.xlu1 %586 }
 0x24a   : > { %v590_v9 = vpop.permute.xlu0 %589  ;;  %v612_v13 = vrot.slane %v587_v4, %v1543_v6 }
 0x24b   : > { %v616_v12 = vrot.slane %v590_v9, %v1543_v6 }
 0x24d   : > { %v593_v5 = vpop.permute.xlu1 %592  ;;  %v641_v18 = vsel %vm493_vm1, %v616_v12, %v612_v13 }
 0x24e   : > { %v620_v14 = vrot.slane %v593_v5, %v1543_v6 }
 0x250   : > { %v642_v20 = vsel %vm495_vm2, %v620_v14, %v641_v18 }
 0x251   : > { %v596_v7 = vpop.permute.xlu1 %595 }
 0x252   : > { %v624_v15 = vrot.slane %v596_v7, %v1543_v6  ;;  %v316_v7 = vld [vmem:[%s1672_s25 + $0x20] sm:$0xff] }
 0x254   : > { %v643_v22 = vsel %vm497_vm3, %v624_v15, %v642_v20 }
 0x255   : > { %v599_v8 = vpop.permute.xlu1 %598 }
 0x256   : > { %v628_v16 = vrot.slane %v599_v8, %v1543_v6 }
 0x258   : > { %v644_v23 = vsel %vm499_vm4, %v628_v16, %v643_v22  ;;  %v317_v16 = vld [vmem:[%s1672_s25 + $0x28] sm:$0xff] }
 0x259   : > { %v602_v11 = vpop.permute.xlu1 %601 }
 0x25a   : > { %v632_v19 = vrot.slane %v602_v11, %v1543_v6 }
 0x25c   : > { %v645_v25 = vsel %vm501_vm5, %v632_v19, %v644_v23 }
 0x25d   : > { %v605_v17 = vpop.permute.xlu1 %604 }
 0x25e   : > { %v636_v21 = vrot.slane %v605_v17, %v1543_v6 }
 0x260   : > { %v646_v30 = vsel %vm503_vm6, %v636_v21, %v645_v25 }
 0x261   : > { %v608_v24 = vpop.permute.xlu1 %607 }
 0x262   : > { %v640_v26 = vrot.slane %v608_v24, %v1543_v6 }
 0x264   : > { %v647_v31 = vsel %vm505_vm7, %v640_v26, %v646_v30 }
 0x265   : > { %v649_v32 = vsel %vm508_vm8, %v647_v31, 0.0 }
 0x266   : > { %650 = vadd.xlane.f32.xlu1 %v649_v32  ;;  %v318_v32 = vld [vmem:[%s1672_s25 + $0x30] sm:$0xff] }
 0x2f3   : > { %v651_v33 = vpop.xlane.xlu1 %650 }
 0x2f4   : > { %v656_v35 = vrot.slane %v651_v33, %v1547_v10  ;;  %v660_v36 = vrot.slane %v651_v33, %v519_v27  ;;  %v664_v37 = vrot.slane %v651_v33, %v523_v28  ;;  %v668_v38 = vrot.slane %v651_v33, %v527_v29 }
 0x2f5   : > { %v672_v40 = vrot.slane %v651_v33, %v531_v34  ;;  %v676_v10 = vrot.slane %v651_v33, %v535_v41  ;;  %v680_v28 = vrot.slane %v651_v33, %v539_v45  ;;  %v684_v34 = vrot.slane %v651_v33, %v543_v49 }
 0x2f6   : > { %1131 = vrcp.f32 %v656_v35 }
 0x2f7   : > { %1133 = vrcp.f32 %v660_v36 }
 0x2f8   : > { %1135 = vrcp.f32 %v664_v37 }
 0x2f9   : > { %1137 = vrcp.f32 %v668_v38 }
 0x2fa   : > { %1139 = vrcp.f32 %v672_v40 }
 0x2fb   : > { %1141 = vrcp.f32 %v676_v10 }
 0x2fc   : > { %1143 = vrcp.f32 %v680_v28 }
 0x2fd   : > { %1145 = vrcp.f32 %v684_v34 }
 0x300   : > { %v1132_v39 = vpop.eup %1131 }
 0x301   : > { %v694_v42 = vmul.f32 %v1132_v39, %v1116_v53  ;;  %v1134_v43 = vpop.eup %1133 }
 0x302   : > { %v696_v27 = vmul.f32 %v1134_v43, %v1609_v54  ;;  %v1136_v44 = vpop.eup %1135  ;;  %v313_v54 = vld [vmem:[%s1672_s25 + $0x8] sm:$0xff] }
 0x303   : > { %718 = vperm.xlu0 %1113, %v694_v42   ;;  %v698_v29 = vmul.f32 %v1136_v44, %v1614_v58  ;;  %v1138_v46 = vpop.eup %1137 }
 0x304   : > { %v700_v47 = vmul.f32 %v1138_v46, %v1617_v61  ;;  %v1140_v41 = vpop.eup %1139 }
 0x305   : > { %v702_v48 = vmul.f32 %v1140_v41, %v1620_v63  ;;  %v1142_v50 = vpop.eup %1141 }
 0x306   : > { %v704_v45 = vmul.f32 %v1142_v50, %v1623_v0  ;;  %v1144_v51 = vpop.eup %1143 }
 0x307   : > { %721 = vperm.xlu0 %1113, %v696_v27   ;;  %v706_v52 = vmul.f32 %v1144_v51, %v1626_v1  ;;  %v1146_v53 = vpop.eup %1145 }
 0x308   : > { %v708_v3 = vmul.f32 %v1146_v53, %v1629_v2 }
 0x30b   : > { %724 = vperm.xlu0 %1113, %v698_v29  }
 0x30f   : > { %727 = vperm.xlu0 %1113, %v700_v47   ;;  %v319_v47 = vld [vmem:[%s1672_s25 + $0x38] sm:$0xff] }
 0x313   : > { %730 = vperm.xlu0 %1113, %v702_v48  }
 0x317   : > { %733 = vperm.xlu0 %1113, %v704_v45  }
 0x31b   : > { %736 = vperm.xlu0 %1113, %v706_v52  }
 0x31f   : > { %739 = vperm.xlu0 %1113, %v708_v3  }
 0x382   : > { %v719_v49 = vpop.permute.xlu0 %718 }
 0x383   : > { %v790_v59 = vmul.f32 %v719_v49, %v312_v56  ;;  %v744_v25 = vrot.slane %v719_v49, %v1543_v6 }
 0x385   : > { %v798_v0 = vsel %vm418_vm0, %v790_v59, 0.0 }
 0x386   : > { %v722_v55 = vpop.permute.xlu0 %721  ;;  %v799_v8 = vrot.slane %v798_v0, 4 }
 0x387   : > { %v791_v58 = vmul.f32 %v722_v55, %v313_v54  ;;  %v748_v23 = vrot.slane %v722_v55, %v1543_v6 }
 0x388   : > { %v800_v17 = vadd.f32 %v799_v8, %v798_v0 }
 0x389   : > { %v805_v63 = vsel %vm418_vm0, %v791_v58, 0.0  ;;  %v773_v43 = vsel %vm493_vm1, %v748_v23, %v744_v25 }
 0x38a   : > { %v725_v60 = vpop.permute.xlu0 %724  ;;  %v806_v5 = vrot.slane %v805_v63, 4  ;;  %v801_v33 = vrot.slane %v800_v17, 2 }
 0x38b   : > { %v792_v61 = vmul.f32 %v725_v60, %v314_v57  ;;  %v752_v30 = vrot.slane %v725_v60, %v1543_v6 }
 0x38c   : > { %v807_v15 = vadd.f32 %v806_v5, %v805_v63  ;;  %v802_v41 = vadd.f32 %v801_v33, %v800_v17 }
 0x38d   : > { %v812_v1 = vsel %vm418_vm0, %v792_v61, 0.0  ;;  %v774_v29 = vsel %vm495_vm2, %v752_v30, %v773_v43 }
 0x38e   : > { %v728_v2 = vpop.permute.xlu0 %727  ;;  %v813_v9 = vrot.slane %v812_v1, 4  ;;  %v808_v26 = vrot.slane %v807_v15, 2 }
 0x38f   : > { %v793_v4 = vmul.f32 %v728_v2, %v315_v62  ;;  %v756_v36 = vrot.slane %v728_v2, %v1543_v6 }
 0x390   : > { %v814_v18 = vadd.f32 %v813_v9, %v812_v1  ;;  %v809_v28 = vadd.f32 %v808_v26, %v807_v15  ;;  %v803_v1 = vrot.slane %v802_v41, 1 }
 0x391   : > { %v819_v11 = vsel %vm418_vm0, %v793_v4, 0.0  ;;  %v775_v50 = vsel %vm497_vm3, %v756_v36, %v774_v29 }
 0x392   : > { %v820_v12 = vrot.slane %v819_v11, 4  ;;  %v731_v13 = vpop.permute.xlu0 %730  ;;  %v815_v35 = vrot.slane %v814_v18, 2  ;;  %v810_v58 = vrot.slane %v809_v28, 1 }
 0x393   : > { %v794_v14 = vmul.f32 %v731_v13, %v316_v7  ;;  %v760_v39 = vrot.slane %v731_v13, %v1543_v6  ;;  %v804_v13 = vadd.f32 %v803_v1, %v802_v41 }
 0x394   : > { %v821_v20 = vadd.f32 %v820_v12, %v819_v11  ;;  %v816_v48 = vadd.f32 %v815_v35, %v814_v18  ;;  %v811_v8 = vadd.f32 %v810_v58, %v809_v28 }
 0x395   : > { %v826_v19 = vsel %vm418_vm0, %v794_v14, 0.0  ;;  %v776_v52 = vsel %vm499_vm4, %v760_v39, %v775_v50 }
 0x396   : > { %v827_v21 = vrot.slane %v826_v19, 4  ;;  %v734_v22 = vpop.permute.xlu0 %733  ;;  %v822_v38 = vrot.slane %v821_v20, 2  ;;  %v817_v62 = vrot.slane %v816_v48, 1  ;;  %v862_v18 = vsel %vm493_vm1, %v811_v8, %v804_v13 }
 0x397   : > { %v795_v24 = vmul.f32 %v734_v22, %v317_v16  ;;  %v764_v27 = vrot.slane %v734_v22, %v1543_v6 }
 0x398   : > { %v828_v31 = vadd.f32 %v827_v21, %v826_v19  ;;  %v823_v51 = vadd.f32 %v822_v38, %v821_v20  ;;  %v818_v12 = vadd.f32 %v817_v62, %v816_v48 }
 0x399   : > { %v833_v37 = vsel %vm418_vm0, %v795_v24, 0.0  ;;  %v777_v55 = vsel %vm501_vm5, %v764_v27, %v776_v52 }
 0x39a   : > { %v834_v40 = vrot.slane %v833_v37, 4  ;;  %v737_v42 = vpop.permute.xlu0 %736  ;;  %v829_v10 = vrot.slane %v828_v31, 2  ;;  %v824_v2 = vrot.slane %v823_v51, 1  ;;  %v863_v21 = vsel %vm495_vm2, %v818_v12, %v862_v18 }
 0x39b   : > { %v796_v44 = vmul.f32 %v737_v42, %v318_v32  ;;  %v768_v34 = vrot.slane %v737_v42, %v1543_v6 }
 0x39c   : > { %v835_v46 = vadd.f32 %v834_v40, %v833_v37  ;;  %v830_v54 = vadd.f32 %v829_v10, %v828_v31  ;;  %v825_v14 = vadd.f32 %v824_v2, %v823_v51 }
 0x39d   : > { %v840_v45 = vsel %vm418_vm0, %v796_v44, 0.0  ;;  %v778_v60 = vsel %vm503_vm6, %v768_v34, %v777_v55 }
 0x39e   : > { %v836_v53 = vrot.slane %v835_v46, 2  ;;  %v841_v3 = vrot.slane %v840_v45, 4  ;;  %v740_v49 = vpop.permute.xlu0 %739  ;;  %v831_v7 = vrot.slane %v830_v54, 1  ;;  %v864_v23 = vsel %vm497_vm3, %v825_v14, %v863_v21 }
 0x39f   : > { %v772_v56 = vrot.slane %v740_v49, %v1543_v6  ;;  %v797_v57 = vmul.f32 %v740_v49, %v319_v47 }
 0x3a0   : > { %v837_v59 = vadd.f32 %v836_v53, %v835_v46  ;;  %v842_v61 = vadd.f32 %v841_v3, %v840_v45  ;;  %v832_v17 = vadd.f32 %v831_v7, %v830_v54 }
 0x3a1   : > { %v779_v63 = vsel %vm505_vm7, %v772_v56, %v778_v60  ;;  %v847_v0 = vsel %vm418_vm0, %v797_v57, 0.0 }
 0x3a2   : > { %v843_v4 = vrot.slane %v842_v61, 2  ;;  %781 = vst.msk [vmem:[%s302_s1] sm:$0xff] %vm508_vm8, %v779_v63  ;;  %v848_v5 = vrot.slane %v847_v0, 4  ;;  %v838_v6 = vrot.slane %v837_v59, 1  ;;  %v865_v25 = vsel %vm499_vm4, %v832_v17, %v864_v23 }
 0x3a4   : > { %v844_v9 = vadd.f32 %v843_v4, %v842_v61  ;;  %v849_v11 = vadd.f32 %v848_v5, %v847_v0  ;;  %v839_v19 = vadd.f32 %v838_v6, %v837_v59 }
 0x3a6   : > { %v845_v15 = vrot.slane %v844_v9, 1  ;;  %v850_v16 = vrot.slane %v849_v11, 2  ;;  %v866_v26 = vsel %vm501_vm5, %v839_v19, %v865_v25 }
 0x3a8   : > { %v851_v20 = vadd.f32 %v850_v16, %v849_v11  ;;  %v846_v22 = vadd.f32 %v845_v15, %v844_v9 }
 0x3aa   : > { %v852_v24 = vrot.slane %v851_v20, 1  ;;  %v867_v31 = vsel %vm503_vm6, %v846_v22, %v866_v26 }
 0x3ac   : > { %v853_v30 = vadd.f32 %v852_v24, %v851_v20 }
 0x3ae   : > { %v868_v32 = vsel %vm505_vm7, %v853_v30, %v867_v31 }
 0x3af   : > { %870 = vst.msk [vmem:[%s296_s6] sm:$0xff] %vm418_vm0, %v868_v32 }
 0x3b0   : > { %1250 = shalt.err (!%p1247_p7)
}
 0x3b1   : > { %s1251_s14 = scalar_lea.hbm %s1728_s11, 128  ;;  %s1255_s20 = scalar_lea.hbm %s1778_s4, 256 }
 0x3b2   : > { %p1252_p0 = scmp.ne.s32.totalorder %s1728_s11, %s1251_s14  ;;  %p1256_p1 = scmp.lt.u32.totalorder %s1728_s11, %s1778_s4 }
 0x3b3   : > { %p1257_p2 = scmp.lt.u32.totalorder %s1255_s20, %s1251_s14  ;;  %p1259_p4 = scmp.lt.u32.totalorder %s1251_s14, %s1728_s11 }
 0x3b4   : > { %p1253_p13 = pnand %p1252_p0, %p1801_p5 }
 0x3b5   : > { %p1258_p10 = por %p1257_p2, %p1256_p1 }
 0x3b6   : > { %p1254_p11 = pneg %p1253_p13 }
 0x3b7   : > { %p1260_p6 = por %p1259_p4, %p1258_p10 }
 0x3b9   : > { %p1261_p9 = pnand %p1260_p6, %p1254_p11 }
 0x3bb   : > { %1264 = shalt.err (!%p1261_p9)
}
 0x3bc   : > { %1058 = dma.vmem_to_hbm [thread:$0]  (%p1801_p5), %s1730_s8, 128, %s1728_s11, %s876_s19  }
 0x3bd PF: > { %s911_s5 = sand.u32 1, %s1295_s15   ;;  %p1802_p12 = scmp.ne.s32.totalorder %s1791_s27, 0 }
 0x3be   : > { %p1803_p3 = scmp.ge.s32.totalorder %s1307_s18, 2  ;;  %s912_s10 = scalar_lea.sflag [#allocation4], %s911_s5 }
 0x3c0   : > { %p1071_p8 = pnand %p1803_p3, %p1802_p12 }
 0x3c2   : > { %1290 = dma.done.wait (!%p1071_p8), %s912_s10, 128  }
 0x3c3   : > { %1292 = vsyncadd (!%p1071_p8), %s912_s10, 4294967168  ;;  %s1804_s9 = sld [smem:[#allocation12_spill]]  ;;  %s1805_s17 = sld [smem:[#allocation13_spill]] }
 0x3c4   : > { %p21_p7 = scmp.ge.s32.totalorder %s1367_s21, 4   ;;  %s1806_s15 = smov %s1299_s16 }
 0x3c5   : > { %s1808_s18 = smov %s1367_s21 }
 0x3c6   :  { %23 = sbr.rel (!%p21_p7) target bundleno = 9 (0x9), region = 113 }
 0x3c9   : > { %s1807_s16 = smov %s1804_s9 }
 0x3cd   :  { %917 = vsyncpa [#allocation3], 1 }
 0x3ce   :  { %919 = vsyncpa [#allocation3 + $0x1], 1 }
 0x3cf   :  { %920 = vsyncpa [#allocation6], 1 }
 0x3d0   :  { %922 = vsyncpa [#allocation6 + $0x1], 1 }
 0x3d1   :  { %923 = vsyncpa [#allocation4], 1 }
 0x3d2   :  { %925 = vsyncpa [#allocation4 + $0x1], 1 }

</bundles_post_ra>
